<compile_context>
chip_gen: v6e
topology: v6e:2x2x1
jax: 0.10.0
libtpu: 0.0.40
codegen_flags: <defaults>
</compile_context>

<pallas_src>
import functools

import jax
import jax.numpy as jnp
from jax.experimental import pallas as pl
from jax.experimental.pallas import tpu as pltpu

# ---- synthetic model dims (small, TPU-tile friendly) ----
Q_DIM = 128          # question_output_dim
IMG_DIM = 128        # image_output_dim
HIDDEN = 512         # fc_1 out
NUM_LABELS = 128     # len(mlb.classes_) -- synthetic stand-in
BATCH = 8

# Default batch tile for real workloads (sweepable by callers).  At tb=1024
# with bf16 activation I/O the whole double-buffered footprint is ~2.5 MB.
DEFAULT_BATCH_TILE = 1024


def _round_up(x, m):
    return ((x + m - 1) // m) * m


def classifier_kernel(q_ref, img_ref, w1_ref, b1_ref, w2_ref, b2_ref,
                      out_ref, x_ref, *, q_dim):
    # Pack the concatenated embedding (torch.cat order: question, image) into a
    # single (tb, q_dim+img_dim) bf16 scratch so fc_1 runs as ONE K=256 dot
    # instead of two half-depth K=128 passes (fills the 256-deep MXU on
    # v6e/v7x).  Casts are no-ops when the caller already supplies bf16.
    x_ref[:, :q_dim] = q_ref[...].astype(jnp.bfloat16)
    x_ref[:, q_dim:] = img_ref[...].astype(jnp.bfloat16)

    h = jnp.dot(x_ref[...], w1_ref[...], preferred_element_type=jnp.float32)
    h = jnp.maximum(h + b1_ref[...], 0.0)          # bias + ReLU fused, f32
    # TODO(synk): training-mode dropout (p=0.5) would use pltpu.prng_seed /
    # pltpu.prng_random_bits; eval-mode (identity) semantics implemented here.
    logits = jnp.dot(h.astype(jnp.bfloat16), w2_ref[...],
                     preferred_element_type=jnp.float32)
    out_ref[...] = (logits + b2_ref[...]).astype(out_ref.dtype)


def classifier_forward(question_embedding, image_embedding, params, *,
                       num_labels=None, batch_tile=DEFAULT_BATCH_TILE,
                       out_dtype=jnp.float32):
    """question_embedding: (B, Q_DIM), image_embedding: (B, IMG_DIM)
       -> logits (B, num_labels) in `out_dtype` (f32 default; pass
       jnp.bfloat16 to halve the outbound HBM stream if downstream allows)."""
    w1, b1, w2, b2 = params
    B, q_dim = question_embedding.shape
    img_dim = image_embedding.shape[1]
    in_dim = q_dim + img_dim
    hidden = w1.shape[1]
    l_pad = w2.shape[1]
    if num_labels is None:
        num_labels = l_pad

    assert w1.shape == (in_dim, hidden)
    assert q_dim % 128 == 0 and img_dim % 128 == 0 and l_pad % 128 == 0, (
        "embedding dims and padded label dim must be lane-aligned (x128)")

    # ---- batch tiling: big tiles, zero-pad to a multiple of the tile -------
    tb = max(8, min(batch_tile, _round_up(B, 8)))
    if B >= 16 and _round_up(B, tb) // tb < 2:
        # Keep >= 2 grid steps so dimension_semantics=("parallel",) can shard
        # across v7x's two TensorCores (no effect on single-TC v5e/v6e).
        tb = max(8, _round_up(-(-B // 2), 8))
    B_pad = _round_up(B, tb)
    if B_pad != B:
        pad = B_pad - B
        question_embedding = jnp.pad(question_embedding, ((0, pad), (0, 0)))
        image_embedding = jnp.pad(image_embedding, ((0, pad), (0, 0)))
    grid = (B_pad // tb,)

    act_bytes = jnp.dtype(question_embedding.dtype).itemsize
    out_bytes = jnp.dtype(out_dtype).itemsize
    w_bytes = jnp.dtype(w1.dtype).itemsize

    # ---- VMEM footprint: double-buffered streamed tiles + resident weights +
    # the concat scratch.  Drives the scoped-VMEM limit (v5e defaults to only
    # 16 MiB; v7x has 64 MiB physical, so cap the request well below that).
    vmem_bytes = (
        2 * tb * q_dim * act_bytes          # question tile (double-buffered)
        + 2 * tb * img_dim * act_bytes      # image tile
        + 2 * tb * l_pad * out_bytes        # output tile
        + 2 * (in_dim * hidden + hidden * l_pad) * w_bytes   # weights
        + 2 * (hidden + l_pad) * 4          # biases (f32)
        + tb * in_dim * 2                   # bf16 concat scratch
    )
    vmem_limit = int(min(max(2 * vmem_bytes + (4 << 20), 16 << 20), 48 << 20))

    flops = 2 * B_pad * in_dim * hidden + 2 * B_pad * hidden * l_pad
    bytes_accessed = (
        B_pad * in_dim * act_bytes                       # streamed activations
        + (in_dim * hidden + hidden * l_pad) * w_bytes   # weights (one pass)
        + (hidden + l_pad) * 4                           # biases
        + B_pad * l_pad * out_bytes                      # logits out
    )

    act_spec = lambda feat: pl.BlockSpec((tb, feat), lambda i: (i, 0))
    # Resident across the whole grid: constant index_map -> DMA'd once, reused.
    # TODO(synk): pipeline_mode=pl.Buffered(1) would drop the unused second
    # buffer (~0.4 MB VMEM); left at the default for lowering compatibility.
    res_spec = lambda r, c: pl.BlockSpec((r, c), lambda i: (0, 0))

    out = pl.pallas_call(
        functools.partial(classifier_kernel, q_dim=q_dim),
        out_shape=jax.ShapeDtypeStruct((B_pad, l_pad), out_dtype),
        grid=grid,
        in_specs=[
            act_spec(q_dim),              # question embedding (streamed)
            act_spec(img_dim),            # image embedding (streamed)
            res_spec(in_dim, hidden),     # w1 (unsplit, K=256; resident)
            res_spec(1, hidden),          # b1
            res_spec(hidden, l_pad),      # w2
            res_spec(1, l_pad),           # b2
        ],
        out_specs=act_spec(l_pad),
        scratch_shapes=[pltpu.VMEM((tb, in_dim), jnp.bfloat16)],
        compiler_params=pltpu.CompilerParams(
            dimension_semantics=("parallel",),
            vmem_limit_bytes=vmem_limit),
        cost_estimate=pl.CostEstimate(
            flops=flops, transcendentals=0, bytes_accessed=bytes_accessed),
    )(question_embedding, image_embedding, w1, b1, w2, b2)

    return out[:B, :num_labels]


def init_params(key, q_dim=Q_DIM, img_dim=IMG_DIM, hidden=HIDDEN,
                num_labels=NUM_LABELS):
    """nn.Linear-style init (uniform +/- 1/sqrt(fan_in)).  fc_1's weight is
    stored pre-transposed as (in, out) with the question rows first (matching
    torch.cat order).  The label dim is zero-padded up to a multiple of 128 so
    the kernel's output stores stay lane-dense.  Weights bf16, biases f32."""
    k1, k2, k3, k4 = jax.random.split(key, 4)
    in_dim = q_dim + img_dim
    l_pad = _round_up(num_labels, 128)
    lim1 = 1.0 / float(in_dim) ** 0.5
    lim2 = 1.0 / float(hidden) ** 0.5
    w1 = jax.random.uniform(k1, (in_dim, hidden), jnp.float32, -lim1, lim1)
    b1 = jax.random.uniform(k2, (1, hidden), jnp.float32, -lim1, lim1)
    w2 = jax.random.uniform(k3, (hidden, num_labels), jnp.float32, -lim2, lim2)
    b2 = jax.random.uniform(k4, (1, num_labels), jnp.float32, -lim2, lim2)
    if l_pad != num_labels:
        w2 = jnp.pad(w2, ((0, 0), (0, l_pad - num_labels)))
        b2 = jnp.pad(b2, ((0, 0), (0, l_pad - num_labels)))
    return (w1.astype(jnp.bfloat16), b1, w2.astype(jnp.bfloat16), b2)


def reference_forward(q, img, params, *, num_labels=NUM_LABELS):
    """Pure-JAX reference mirroring the kernel's bf16-operand / f32-accumulate
    math (cat -> fc1 -> ReLU -> fc2), sliced to the true label count."""
    w1, b1, w2, b2 = params
    x = jnp.concatenate([q, img], axis=1).astype(jnp.bfloat16)
    h = jnp.dot(x, w1, preferred_element_type=jnp.float32) + b1
    h = jnp.maximum(h, 0.0)
    logits = jnp.dot(h.astype(jnp.bfloat16), w2,
                     preferred_element_type=jnp.float32) + b2
    return logits[:, :num_labels]


if __name__ == "__main__":
    key = jax.random.PRNGKey(0)
    kq, ki, kp = jax.random.split(key, 3)
    # Upstream encoders should emit bf16 embeddings: the in-kernel casts become
    # no-ops and the inbound HBM stream halves (dominant traffic at scale).
    q = jax.random.normal(kq, (BATCH, Q_DIM), jnp.float32).astype(jnp.bfloat16)
    img = jax.random.normal(ki, (BATCH, IMG_DIM), jnp.float32).astype(jnp.bfloat16)
    params = init_params(kp)

    logits = classifier_forward(q, img, params, num_labels=NUM_LABELS)
    logits = jax.block_until_ready(logits)

    ref = reference_forward(q, img, params, num_labels=NUM_LABELS)
    assert logits.shape == (BATCH, NUM_LABELS), logits.shape
    max_err = float(jnp.max(jnp.abs(logits.astype(jnp.float32) - ref)))
    assert jnp.allclose(logits.astype(jnp.float32), ref,
                        atol=2e-3, rtol=2e-3), max_err
    print("KERNEL_OK")
</pallas_src>

<mosaic_0001>
module attributes {stable_mosaic.version = 11 : i64} {
  func.func @classifier_kernel(%arg0: i32, %arg1: memref<8x128xbf16, #tpu.memory_space<vmem>>, %arg2: memref<8x128xbf16, #tpu.memory_space<vmem>>, %arg3: memref<256x512xbf16, #tpu.memory_space<vmem>>, %arg4: memref<1x512xf32, #tpu.memory_space<vmem>>, %arg5: memref<512x128xbf16, #tpu.memory_space<vmem>>, %arg6: memref<1x128xf32, #tpu.memory_space<vmem>>, %arg7: memref<8x128xf32, #tpu.memory_space<vmem>>, %arg8: memref<8x256xbf16, #tpu.memory_space<vmem>>) attributes {dimension_semantics = [#tpu.dimension_semantics<parallel>], iteration_bounds = array<i64: 1>, scalar_prefetch = 0 : i64, scratch_operands = 1 : i64, tpu.core_type = #tpu.core_type<tc>, window_params = [{transform_indices = @transform_0, window_bounds = array<i64: 8, 128>}, {transform_indices = @transform_1, window_bounds = array<i64: 8, 128>}, {pipeline_mode = #tpu.pipeline_mode<synchronous>, transform_indices = @transform_2, window_bounds = array<i64: 256, 512>}, {pipeline_mode = #tpu.pipeline_mode<synchronous>, transform_indices = @transform_3, window_bounds = array<i64: 1, 512>}, {pipeline_mode = #tpu.pipeline_mode<synchronous>, transform_indices = @transform_4, window_bounds = array<i64: 512, 128>}, {pipeline_mode = #tpu.pipeline_mode<synchronous>, transform_indices = @transform_5, window_bounds = array<i64: 1, 128>}, {transform_indices = @transform_6, window_bounds = array<i64: 8, 128>}]} {
    %c0 = arith.constant 0 : index
    %c0_0 = arith.constant 0 : index
    %0 = vector.load %arg1[%c0, %c0_0] : memref<8x128xbf16, #tpu.memory_space<vmem>>, vector<8x128xbf16>
    %c0_1 = arith.constant 0 : index
    %c0_2 = arith.constant 0 : index
    %1 = vector.load %arg8[%c0_1, %c0_2] : memref<8x256xbf16, #tpu.memory_space<vmem>>, vector<8x128xbf16>
    tpu.vector_store %arg8[%c0_1, %c0_2], %0 {strides = array<i32>} : memref<8x256xbf16, #tpu.memory_space<vmem>>, vector<8x128xbf16>,
    %c0_3 = arith.constant 0 : index
    %c0_4 = arith.constant 0 : index
    %2 = vector.load %arg2[%c0_3, %c0_4] : memref<8x128xbf16, #tpu.memory_space<vmem>>, vector<8x128xbf16>
    %c0_5 = arith.constant 0 : index
    %c128 = arith.constant 128 : index
    %3 = vector.load %arg8[%c0_5, %c128] : memref<8x256xbf16, #tpu.memory_space<vmem>>, vector<8x128xbf16>
    tpu.vector_store %arg8[%c0_5, %c128], %2 {strides = array<i32>} : memref<8x256xbf16, #tpu.memory_space<vmem>>, vector<8x128xbf16>,
    %c0_6 = arith.constant 0 : index
    %c0_7 = arith.constant 0 : index
    %4 = vector.load %arg8[%c0_6, %c0_7] : memref<8x256xbf16, #tpu.memory_space<vmem>>, vector<8x256xbf16>
    %c0_8 = arith.constant 0 : index
    %c0_9 = arith.constant 0 : index
    %5 = vector.load %arg3[%c0_8, %c0_9] : memref<256x512xbf16, #tpu.memory_space<vmem>>, vector<256x512xbf16>
    %cst = arith.constant dense<0.000000e+00> : vector<8x512xf32>
    %6 = tpu.matmul %4, %5, %cst {dimension_numbers = #tpu.dot_dimension_numbers<[1], [0], [0], [1], [0, 0, 1, 1], [], []>} : vector<8x256xbf16>, vector<256x512xbf16>, vector<8x512xf32> -> vector<8x512xf32>
    %c0_10 = arith.constant 0 : index
    %c0_11 = arith.constant 0 : index
    %7 = vector.load %arg4[%c0_10, %c0_11] : memref<1x512xf32, #tpu.memory_space<vmem>>, vector<1x512xf32>
    %8 = vector.broadcast %7 : vector<1x512xf32> to vector<8x512xf32>
    %9 = arith.addf %6, %8 : vector<8x512xf32>
    %cst_12 = arith.constant 0.000000e+00 : f32
    %10 = vector.broadcast %cst_12 : f32 to vector<8x512xf32>
    %11 = arith.maximumf %9, %10 : vector<8x512xf32>
    %12 = arith.truncf %11 : vector<8x512xf32> to vector<8x512xbf16>
    %c0_13 = arith.constant 0 : index
    %c0_14 = arith.constant 0 : index
    %13 = vector.load %arg5[%c0_13, %c0_14] : memref<512x128xbf16, #tpu.memory_space<vmem>>, vector<512x128xbf16>
    %cst_15 = arith.constant dense<0.000000e+00> : vector<8x128xf32>
    %14 = tpu.matmul %12, %13, %cst_15 {dimension_numbers = #tpu.dot_dimension_numbers<[1], [0], [0], [1], [0, 0, 1, 1], [], []>} : vector<8x512xbf16>, vector<512x128xbf16>, vector<8x128xf32> -> vector<8x128xf32>
    %c0_16 = arith.constant 0 : index
    %c0_17 = arith.constant 0 : index
    %15 = vector.load %arg6[%c0_16, %c0_17] : memref<1x128xf32, #tpu.memory_space<vmem>>, vector<1x128xf32>
    %16 = vector.broadcast %15 : vector<1x128xf32> to vector<8x128xf32>
    %17 = arith.addf %14, %16 : vector<8x128xf32>
    %c0_18 = arith.constant 0 : index
    %c0_19 = arith.constant 0 : index
    %18 = vector.load %arg7[%c0_18, %c0_19] : memref<8x128xf32, #tpu.memory_space<vmem>>, vector<8x128xf32>
    tpu.vector_store %arg7[%c0_18, %c0_19], %17 {strides = array<i32>} : memref<8x128xf32, #tpu.memory_space<vmem>>, vector<8x128xf32>,
    return
  }
  func.func @transform_0(%arg0: i32) -> (i32, i32) {
    %c0_i32 = arith.constant 0 : i32
    %c0_i32_0 = arith.constant 0 : i32
    return %arg0, %c0_i32 : i32, i32
  }
  func.func @transform_1(%arg0: i32) -> (i32, i32) {
    %c0_i32 = arith.constant 0 : i32
    %c0_i32_0 = arith.constant 0 : i32
    return %arg0, %c0_i32 : i32, i32
  }
  func.func @transform_2(%arg0: i32) -> (i32, i32) {
    %c0_i32 = arith.constant 0 : i32
    %c0_i32_0 = arith.constant 0 : i32
    %c0_i32_1 = arith.constant 0 : i32
    return %c0_i32, %c0_i32_0 : i32, i32
  }
  func.func @transform_3(%arg0: i32) -> (i32, i32) {
    %c0_i32 = arith.constant 0 : i32
    %c0_i32_0 = arith.constant 0 : i32
    %c0_i32_1 = arith.constant 0 : i32
    return %c0_i32, %c0_i32_0 : i32, i32
  }
  func.func @transform_4(%arg0: i32) -> (i32, i32) {
    %c0_i32 = arith.constant 0 : i32
    %c0_i32_0 = arith.constant 0 : i32
    %c0_i32_1 = arith.constant 0 : i32
    return %c0_i32, %c0_i32_0 : i32, i32
  }
  func.func @transform_5(%arg0: i32) -> (i32, i32) {
    %c0_i32 = arith.constant 0 : i32
    %c0_i32_0 = arith.constant 0 : i32
    %c0_i32_1 = arith.constant 0 : i32
    return %c0_i32, %c0_i32_0 : i32, i32
  }
  func.func @transform_6(%arg0: i32) -> (i32, i32) {
    %c0_i32 = arith.constant 0 : i32
    %c0_i32_0 = arith.constant 0 : i32
    return %arg0, %c0_i32 : i32, i32
  }
}

</mosaic_0001>

<bundles_post_ra>
// kernel: tpu_custom_call.1
= control target key start
LH: loop header
LB: loop body
LE: loop exit
PB: predicated region body
PF: predicated region fallthrough
CT: control target
= control target key end

     0   :  { %11 = vsyncpa [#allocation4], 0  ;;  %s1400_s0 = inlined_call_operand.hbm [shape: bf16[8,128], index: 0, kind: input, shape index: {}]   ;;  %s1401_s1 = inlined_call_operand.hbm [shape: bf16[8,128], index: 1, kind: input, shape index: {}]   ;;  %s1402_s2 = inlined_call_operand.hbm [shape: bf16[256,512], index: 2, kind: input, shape index: {}]   ;;  %s1403_s3 = inlined_call_operand.vmem [shape: f32[1,512], index: 3, kind: input, shape index: {}]   ;;  %s1404_s4 = inlined_call_operand.hbm [shape: bf16[512,128], index: 4, kind: input, shape index: {}]   ;;  %s1405_s5 = inlined_call_operand.vmem [shape: f32[1,128], index: 5, kind: input, shape index: {}]   ;;  %s1406_s6 = inlined_call_operand.hbm [shape: f32[8,128], index: 6, kind: output, shape index: {}]  }
   0x1   :  { %12 = vsyncpa [#allocation7], 0 }
   0x2   :  { %13 = vsyncpa [#allocation10], 0 }
   0x3   :  { %14 = vsyncpa [#allocation5], 0  ;;  %s1335_s21 = smov [#allocation6]   ;;  %s1336_s23 = smov [#allocation3]  }
   0x4   :  { %s31_s22 = sshll.u32 %s1335_s21, 4  ;;  %s21_s24 = sshll.u32 %s1336_s23, 4  ;;  %s32_s22 = int_to_ptr.vmem [resolvable:$true] %s31_s22  ;;  %s22_s24 = int_to_ptr.vmem [resolvable:$true] %s21_s24 }
   0x5   :  { %s1235_s25 = scalar_lea.vmem %s32_s22, 64  ;;  %p1240_p1 = scmp.lt.s32.totalorder %s32_s22, %s32_s22 }
   0x6   :  { %p1236_p0 = scmp.ne.s32.totalorder %s32_s22, %s1235_s25  ;;  %p1241_p2 = scmp.lt.s32.totalorder %s1235_s25, %s1235_s25 }
   0x8   :  { %p1242_p3 = por %p1241_p2, %p1240_p1 }
   0xa   :  { %p1243_p4 = pnand %p1242_p3, %p1236_p0 }
   0xc   :  { %1246 = shalt.err (!%p1243_p4)
}
   0xd   :  { %34 = dma.hbm_to_vmem [thread:$0]  %s1401_s1, 64, %s32_s22, [#allocation7]  }
   0xe   :  { %s1255_s28 = scalar_lea.vmem %s22_s24, 64  ;;  %p1260_p6 = scmp.lt.s32.totalorder %s22_s24, %s22_s24 }
   0xf   :  { %p1256_p5 = scmp.ne.s32.totalorder %s22_s24, %s1255_s28  ;;  %p1261_p7 = scmp.lt.s32.totalorder %s1255_s28, %s1255_s28 }
  0x11   :  { %p1262_p8 = por %p1261_p7, %p1260_p6 }
  0x13   :  { %p1263_p9 = pnand %p1262_p8, %p1256_p5 }
  0x15   :  { %1266 = shalt.err (!%p1263_p9)
}
  0x16   :  { %24 = dma.hbm_to_vmem [thread:$0]  %s1400_s0, 64, %s22_s24, [#allocation4]  }
  0x17   :  { %s1337_s7 = smov [#allocation8]  }
  0x18   :  { %s40_s8 = sshll.u32 %s1337_s7, 4  ;;  %s41_s8 = int_to_ptr.vmem [resolvable:$true] %s40_s8 }
  0x19   :  { %s1275_s9 = scalar_lea.vmem %s41_s8, 8192  ;;  %p1280_p11 = scmp.lt.s32.totalorder %s41_s8, %s41_s8 }
  0x1a   :  { %p1276_p10 = scmp.ne.s32.totalorder %s41_s8, %s1275_s9  ;;  %p1281_p12 = scmp.lt.s32.totalorder %s1275_s9, %s1275_s9 }
  0x1c   :  { %p1282_p13 = por %p1281_p12, %p1280_p11 }
  0x1e   :  { %p1283_p0 = pnand %p1282_p13, %p1276_p10 }
  0x20   :  { %1286 = shalt.err (!%p1283_p0)
}
  0x21   :  { %s1338_s1 = smov 256   ;;  %s1339_s10 = smov 16  }
  0x22   :  { %46 = dma.hbm_to_vmem [thread:$0]  %s1402_s2, 8192, %s41_s8, [#allocation7], %s1338_s1, %s1338_s1, %s1339_s10  }
  0x23   :  { %s1340_s13 = smov [#allocation9]  }
  0x24   :  { %s54_s14 = sshll.u32 %s1340_s13, 4  ;;  %s55_s14 = int_to_ptr.vmem [resolvable:$true] %s54_s14 }
  0x25   :  { %s1295_s0 = scalar_lea.vmem %s55_s14, 4096  ;;  %p1300_p2 = scmp.lt.s32.totalorder %s55_s14, %s55_s14 }
  0x26   :  { %p1296_p1 = scmp.ne.s32.totalorder %s55_s14, %s1295_s0  ;;  %p1301_p3 = scmp.lt.s32.totalorder %s1295_s0, %s1295_s0 }
  0x28   :  { %p1302_p4 = por %p1301_p3, %p1300_p2 }
  0x2a   :  { %p1303_p5 = pnand %p1302_p4, %p1296_p1 }
  0x2c   :  { %1306 = shalt.err (!%p1303_p5)
}
  0x2d   :  { %s1341_s15 = smov 64   ;;  %s1342_s16 = smov 4  }
  0x2e   :  { %60 = dma.hbm_to_vmem [thread:$0]  %s1404_s4, 4096, %s55_s14, [#allocation10], %s1341_s15, %s1341_s15, %s1342_s16  }
  0x2f   :  { %1327 = dma.done.wait [#allocation4], 64  }
  0x30   :  { %1328 = vsyncadd [#allocation4], 4294967232 }
  0x31   :  { %1329 = dma.done.wait [#allocation7], 8256  }
  0x32   :  { %1330 = vsyncadd [#allocation7], 4294959040 }
  0x33   :  { %1331 = dma.done.wait [#allocation10], 4096  }
  0x34   :  { %1332 = vsyncadd [#allocation10], 4294963200  ;;  %v1097_v0 = vld [vmem:[#allocation8 + $0xe4] ss:$16 sps:$4 sm:$0xff]   ;;  %v1099_v1 = vld [vmem:[#allocation8 + $0xec] ss:$16 sps:$4 sm:$0xff]  }
  0x35   :  { %494 = vmatprep.subr.bf16.mxu0 %v1097_v0  ;;  %v1101_v2 = vld [vmem:[#allocation8 + $0xe0] ss:$16 sps:$4 sm:$0xff]   ;;  %v1102_v3 = vld [vmem:[#allocation8 + $0xe8] ss:$16 sps:$4 sm:$0xff]   ;;  %535 = vmatprep.subr.bf16.mxu1 %v1099_v1  ;;  %v1103_v4 = vld [vmem:[#allocation8 + $0xc4] ss:$16 sps:$4 sm:$0xff]  }
  0x36   :  { %495 = vmatpush1.bf16.msra.mxu0 %v1101_v2  ;;  %536 = vmatpush1.bf16.msra.mxu1 %v1102_v3  ;;  %v1105_v5 = vld [vmem:[#allocation8 + $0xcc] ss:$16 sps:$4 sm:$0xff]   ;;  %v1107_v6 = vld [vmem:[#allocation8 + $0xc0] ss:$16 sps:$4 sm:$0xff]   ;;  %v1108_v7 = vld [vmem:[#allocation8 + $0xc8] ss:$16 sps:$4 sm:$0xff]  }
  0x37   :  { %496 = vmatprep.subr.bf16.mxu0 %v1103_v4  ;;  %537 = vmatprep.subr.bf16.mxu1 %v1105_v5  ;;  %v1109_v8 = vld [vmem:[#allocation8 + $0xa4] ss:$16 sps:$4 sm:$0xff]   ;;  %v1111_v9 = vld [vmem:[#allocation8 + $0xac] ss:$16 sps:$4 sm:$0xff]   ;;  %v1113_v10 = vld [vmem:[#allocation8 + $0xa0] ss:$16 sps:$4 sm:$0xff]  }
  0x38   :  { %v1114_v11 = vld [vmem:[#allocation8 + $0xa8] ss:$16 sps:$4 sm:$0xff]   ;;  %v1115_v12 = vld [vmem:[#allocation8 + $0x84] ss:$16 sps:$4 sm:$0xff]   ;;  %v1117_v13 = vld [vmem:[#allocation8 + $0x8c] ss:$16 sps:$4 sm:$0xff]  }
  0x39   :  { %v1119_v14 = vld [vmem:[#allocation8 + $0x80] ss:$16 sps:$4 sm:$0xff]   ;;  %v1120_v15 = vld [vmem:[#allocation8 + $0x88] ss:$16 sps:$4 sm:$0xff]   ;;  %v1121_v16 = vld [vmem:[#allocation8 + $0x64] ss:$16 sps:$4 sm:$0xff]  }
  0x3a   :  { %497 = vmatpush1.bf16.msra.mxu0 %v1107_v6  ;;  %538 = vmatpush1.bf16.msra.mxu1 %v1108_v7  ;;  %v1123_v17 = vld [vmem:[#allocation8 + $0x6c] ss:$16 sps:$4 sm:$0xff]   ;;  %v1125_v18 = vld [vmem:[#allocation8 + $0x60] ss:$16 sps:$4 sm:$0xff]   ;;  %v1126_v19 = vld [vmem:[#allocation8 + $0x68] ss:$16 sps:$4 sm:$0xff]  }
  0x3b   :  { %498 = vmatprep.subr.bf16.mxu0 %v1109_v8  ;;  %539 = vmatprep.subr.bf16.mxu1 %v1111_v9  ;;  %v1127_v20 = vld [vmem:[#allocation8 + $0x44] ss:$16 sps:$4 sm:$0xff]   ;;  %v1129_v21 = vld [vmem:[#allocation8 + $0x4c] ss:$16 sps:$4 sm:$0xff]   ;;  %v1131_v22 = vld [vmem:[#allocation8 + $0x40] ss:$16 sps:$4 sm:$0xff]  }
  0x3c   :  { %v1132_v23 = vld [vmem:[#allocation8 + $0x48] ss:$16 sps:$4 sm:$0xff]   ;;  %v1133_v24 = vld [vmem:[#allocation8 + $0x24] ss:$16 sps:$4 sm:$0xff]   ;;  %v1135_v25 = vld [vmem:[#allocation8 + $0x2c] ss:$16 sps:$4 sm:$0xff]  }
  0x3d   :  { %v1137_v26 = vld [vmem:[#allocation8 + $0x20] ss:$16 sps:$4 sm:$0xff]   ;;  %v1138_v27 = vld [vmem:[#allocation8 + $0x28] ss:$16 sps:$4 sm:$0xff]   ;;  %v1139_v28 = vld [vmem:[#allocation8 + $0x4] ss:$16 sps:$4 sm:$0xff]  }
  0x3e   :  { %499 = vmatpush1.bf16.msra.mxu0 %v1113_v10  ;;  %540 = vmatpush1.bf16.msra.mxu1 %v1114_v11  ;;  %v1141_v29 = vld [vmem:[#allocation8 + $0xc] ss:$16 sps:$4 sm:$0xff]   ;;  %v1143_v30 = vld [vmem:[#allocation8] ss:$16 sps:$4 sm:$0xff]   ;;  %v1144_v31 = vld [vmem:[#allocation8 + $0x8] ss:$16 sps:$4 sm:$0xff]  }
  0x3f   :  { %500 = vmatprep.subr.bf16.mxu0 %v1115_v12  ;;  %541 = vmatprep.subr.bf16.mxu1 %v1117_v13  ;;  %v1145_v32 = vld [vmem:[#allocation8 + $0x1e4] ss:$16 sps:$4 sm:$0xff]   ;;  %v1147_v33 = vld [vmem:[#allocation8 + $0x1ec] ss:$16 sps:$4 sm:$0xff]   ;;  %v1149_v34 = vld [vmem:[#allocation8 + $0x1e0] ss:$16 sps:$4 sm:$0xff]  }
  0x40   :  { %v1150_v35 = vld [vmem:[#allocation8 + $0x1e8] ss:$16 sps:$4 sm:$0xff]   ;;  %v1151_v36 = vld [vmem:[#allocation8 + $0x1c4] ss:$16 sps:$4 sm:$0xff]   ;;  %v1153_v37 = vld [vmem:[#allocation8 + $0x1cc] ss:$16 sps:$4 sm:$0xff]  }
  0x41   :  { %v1155_v38 = vld [vmem:[#allocation8 + $0x1c0] ss:$16 sps:$4 sm:$0xff]   ;;  %v1156_v39 = vld [vmem:[#allocation8 + $0x1c8] ss:$16 sps:$4 sm:$0xff]   ;;  %v1157_v40 = vld [vmem:[#allocation8 + $0x1a4] ss:$16 sps:$4 sm:$0xff]  }
  0x42   :  { %501 = vmatpush1.bf16.msra.mxu0 %v1119_v14  ;;  %542 = vmatpush1.bf16.msra.mxu1 %v1120_v15  ;;  %v1159_v41 = vld [vmem:[#allocation8 + $0x1ac] ss:$16 sps:$4 sm:$0xff]   ;;  %v1161_v42 = vld [vmem:[#allocation8 + $0x1a0] ss:$16 sps:$4 sm:$0xff]   ;;  %v1162_v43 = vld [vmem:[#allocation8 + $0x1a8] ss:$16 sps:$4 sm:$0xff]  }
  0x43   :  { %502 = vmatprep.subr.bf16.mxu0 %v1121_v16  ;;  %543 = vmatprep.subr.bf16.mxu1 %v1123_v17  ;;  %v1163_v44 = vld [vmem:[#allocation8 + $0x184] ss:$16 sps:$4 sm:$0xff]   ;;  %v1165_v45 = vld [vmem:[#allocation8 + $0x18c] ss:$16 sps:$4 sm:$0xff]   ;;  %v1167_v46 = vld [vmem:[#allocation8 + $0x180] ss:$16 sps:$4 sm:$0xff]  }
  0x44   :  { %v1168_v47 = vld [vmem:[#allocation8 + $0x188] ss:$16 sps:$4 sm:$0xff]   ;;  %v78_v49 = vld [vmem:[#allocation6] sm:$0xf]  ;;  %v1169_v50 = vld [vmem:[#allocation8 + $0x164] ss:$16 sps:$4 sm:$0xff]  }
  0x45   :  { %v76_v48 = vld [vmem:[#allocation3] sm:$0xf]  ;;  %79 = vst [vmem:[#allocation2 + $0x4] sm:$0xf] %v78_v49  ;;  %v1171_v51 = vld [vmem:[#allocation8 + $0x16c] ss:$16 sps:$4 sm:$0xff]  }
  0x46   :  { %503 = vmatpush1.bf16.msra.mxu0 %v1125_v18  ;;  %544 = vmatpush1.bf16.msra.mxu1 %v1126_v19  ;;  %77 = vst [vmem:[#allocation2] sm:$0xf] %v76_v48  ;;  %v1173_v52 = vld [vmem:[#allocation8 + $0x160] ss:$16 sps:$4 sm:$0xff]   ;;  %v1174_v53 = vld [vmem:[#allocation8 + $0x168] ss:$16 sps:$4 sm:$0xff]  }
  0x47   :  { %504 = vmatprep.subr.bf16.mxu0 %v1127_v20  ;;  %545 = vmatprep.subr.bf16.mxu1 %v1129_v21  ;;  %v1175_v54 = vld [vmem:[#allocation8 + $0x144] ss:$16 sps:$4 sm:$0xff]   ;;  %v1177_v55 = vld [vmem:[#allocation8 + $0x14c] ss:$16 sps:$4 sm:$0xff]   ;;  %v1179_v56 = vld [vmem:[#allocation8 + $0x140] ss:$16 sps:$4 sm:$0xff]  }
  0x48   :  { %v1180_v57 = vld [vmem:[#allocation8 + $0x148] ss:$16 sps:$4 sm:$0xff]   ;;  %v1181_v59 = vld [vmem:[#allocation8 + $0x124] ss:$16 sps:$4 sm:$0xff]   ;;  %v1183_v61 = vld [vmem:[#allocation8 + $0x12c] ss:$16 sps:$4 sm:$0xff]  }
  0x49   :  { %v1185_v62 = vld [vmem:[#allocation8 + $0x120] ss:$16 sps:$4 sm:$0xff]   ;;  %v1186_v63 = vld [vmem:[#allocation8 + $0x128] ss:$16 sps:$4 sm:$0xff]   ;;  %v1187_v0 = vld [vmem:[#allocation8 + $0x104] ss:$16 sps:$4 sm:$0xff]  }
  0x4a   :  { %505 = vmatpush1.bf16.msra.mxu0 %v1131_v22  ;;  %546 = vmatpush1.bf16.msra.mxu1 %v1132_v23  ;;  %v1189_v1 = vld [vmem:[#allocation8 + $0x10c] ss:$16 sps:$4 sm:$0xff]   ;;  %v1191_v2 = vld [vmem:[#allocation8 + $0x100] ss:$16 sps:$4 sm:$0xff]   ;;  %v1192_v3 = vld [vmem:[#allocation8 + $0x108] ss:$16 sps:$4 sm:$0xff]  }
  0x4b   :  { %506 = vmatprep.subr.bf16.mxu0 %v1133_v24  ;;  %547 = vmatprep.subr.bf16.mxu1 %v1135_v25  ;;  %v1195_v4 = vld [vmem:[#allocation9 + $0x78] sm:$0xff]   ;;  %v1199_v9 = vld [vmem:[#allocation9 + $0x70] sm:$0xff]   ;;  %v1203_v13 = vld [vmem:[#allocation9 + $0x68] sm:$0xff]   ;;  %s1343_s20 = smov [#allocation11]  }
  0x4c   :  { %v1196_v5 = vld [vmem:[#allocation9 + $0xf8] sm:$0xff]   ;;  %v1200_v10 = vld [vmem:[#allocation9 + $0xf0] sm:$0xff]   ;;  %v1204_v14 = vld [vmem:[#allocation9 + $0xe8] sm:$0xff]   ;;  %s934_s21 = sshll.u32 %s1343_s20, 4  ;;  %s935_s21 = int_to_ptr.vmem [resolvable:$true] %s934_s21 }
  0x4d   :  { %v80_v58 = vld [vmem:[#allocation2] sm:$0xff]  ;;  %v1197_v6 = vld [vmem:[#allocation9 + $0x38] sm:$0xff]   ;;  %v1205_v15 = vld [vmem:[#allocation9 + $0x28] sm:$0xff]   ;;  %s1307_s22 = scalar_lea.vmem %s935_s21, 128  ;;  %p1312_p7 = scmp.lt.s32.totalorder %s935_s21, %s935_s21 }
  0x4e   :  { %507 = vmatpush1.bf16.msra.mxu0 %v1137_v26  ;;  %548 = vmatpush1.bf16.msra.mxu1 %v1138_v27  ;;  %v946_v60 = vcombine.high %v80_v58, %v80_v58  ;;  %v945_v7 = vcombine.low %v80_v58, %v80_v58  ;;  %v1198_v8 = vld [vmem:[#allocation9 + $0xb8] sm:$0xff]   ;;  %v1201_v11 = vld [vmem:[#allocation9 + $0x30] sm:$0xff]   ;;  %v1206_v16 = vld [vmem:[#allocation9 + $0xa8] sm:$0xff]   ;;  %p1308_p6 = scmp.ne.s32.totalorder %s935_s21, %s1307_s22  ;;  %p1313_p8 = scmp.lt.s32.totalorder %s1307_s22, %s1307_s22 }
  0x4f   :  { %508 = vmatprep.subr.bf16.mxu0 %v1139_v28  ;;  %549 = vmatprep.subr.bf16.mxu1 %v1141_v29  ;;  %v1202_v12 = vld [vmem:[#allocation9 + $0xb0] sm:$0xff]   ;;  %v1207_v17 = vld [vmem:[#allocation9 + $0x60] sm:$0xff]   ;;  %v1211_v21 = vld [vmem:[#allocation9 + $0x58] sm:$0xff]  }
  0x50   :  { %526 = vmatprep.mubr.bf16.mxu0 %v946_v60  ;;  %567 = vmatprep.mubr.bf16.mxu1 %v946_v60  ;;  %v1208_v18 = vld [vmem:[#allocation9 + $0xe0] sm:$0xff]   ;;  %v1212_v22 = vld [vmem:[#allocation9 + $0xd8] sm:$0xff]   ;;  %v1215_v25 = vld [vmem:[#allocation9 + $0x50] sm:$0xff]   ;;  %p1314_p9 = por %p1313_p8, %p1312_p7 }
  0x51   :  { %v1209_v19 = vld [vmem:[#allocation9 + $0x20] sm:$0xff]   ;;  %v1213_v23 = vld [vmem:[#allocation9 + $0x18] sm:$0xff]   ;;  %v1216_v26 = vld [vmem:[#allocation9 + $0xd0] sm:$0xff]  }
  0x52   :  { %509 = vmatpush1.bf16.msra.mxu0 %v1143_v30  ;;  %550 = vmatpush1.bf16.msra.mxu1 %v1144_v31  ;;  %v1210_v20 = vld [vmem:[#allocation9 + $0xa0] sm:$0xff]   ;;  %v1214_v24 = vld [vmem:[#allocation9 + $0x98] sm:$0xff]   ;;  %v1217_v27 = vld [vmem:[#allocation9 + $0x10] sm:$0xff]   ;;  %p1315_p10 = pnand %p1314_p9, %p1308_p6 }
  0x53   :  { %510 = vmatprep.subr.bf16.mxu0 %v1145_v32  ;;  %551 = vmatprep.subr.bf16.mxu1 %v1147_v33  ;;  %v1218_v28 = vld [vmem:[#allocation9 + $0x90] sm:$0xff]   ;;  %v1219_v29 = vld [vmem:[#allocation9 + $0x48] sm:$0xff]   ;;  %v1223_v33 = vld [vmem:[#allocation9 + $0x40] sm:$0xff]  }
  0x54   :  { %v1220_v30 = vld [vmem:[#allocation9 + $0xc8] sm:$0xff]  }
  0x55   :  { %v1221_v31 = vld [vmem:[#allocation9 + $0x8] sm:$0xff]  }
  0x56   :  { %511 = vmatpush2.bf16.msra.mxu0 %v1149_v34  ;;  %552 = vmatpush2.bf16.msra.mxu1 %v1150_v35  ;;  %v1222_v32 = vld [vmem:[#allocation9 + $0x88] sm:$0xff]   ;;  %v1224_v34 = vld [vmem:[#allocation9 + $0xc0] sm:$0xff]  }
  0x57   :  { %512 = vmatprep.subr.bf16.mxu0 %v1151_v36  ;;  %553 = vmatprep.subr.bf16.mxu1 %v1153_v37  ;;  %v1225_v35 = vld [vmem:[#allocation9] sm:$0xff]   ;;  %v147_v37 = vlaneseq }
  0x58   :  { %v1226_v36 = vld [vmem:[#allocation9 + $0x80] sm:$0xff]  }
  0x5a   :  { %513 = vmatpush2.bf16.msra.mxu0 %v1155_v38  ;;  %554 = vmatpush2.bf16.msra.mxu1 %v1156_v39  ;;  %v148_v38 = vshrl.u32 %v147_v37, 7 }
  0x5b   :  { %514 = vmatprep.subr.bf16.mxu0 %v1157_v40  ;;  %555 = vmatprep.subr.bf16.mxu1 %v1159_v41  ;;  %v145_v41 = vld [vmem:[%s1403_s3] sm:$0xf] }
  0x5c   :  { %v149_v39 = vsub.s32 0, %v148_v38  ;;  %v157_v40 = vsub.s32 2, %v148_v38 }
  0x5e   :  { %515 = vmatpush2.bf16.msra.mxu0 %v1161_v42  ;;  %556 = vmatpush2.bf16.msra.mxu1 %v1162_v43  ;;  %v153_v42 = vsub.s32 1, %v148_v38  ;;  %v161_v43 = vsub.s32 3, %v148_v38 }
  0x5f   :  { %516 = vmatprep.subr.bf16.mxu0 %v1163_v44  ;;  %557 = vmatprep.subr.bf16.mxu1 %v1165_v45  ;;  %v150_v44 = vrot.slane %v145_v41, %v149_v39  ;;  %v158_v45 = vrot.slane %v145_v41, %v157_v40 }
  0x62   :  { %517 = vmatpush2.bf16.msra.mxu0 %v1167_v46  ;;  %558 = vmatpush2.bf16.msra.mxu1 %v1168_v47  ;;  %v154_v46 = vrot.slane %v145_v41, %v153_v42  ;;  %v162_v47 = vrot.slane %v145_v41, %v161_v43 }
  0x63   :  { %518 = vmatprep.subr.bf16.mxu0 %v1169_v50  ;;  %559 = vmatprep.subr.bf16.mxu1 %v1171_v51 }
  0x66   :  { %519 = vmatpush2.bf16.msra.mxu0 %v1173_v52  ;;  %560 = vmatpush2.bf16.msra.mxu1 %v1174_v53 }
  0x67   :  { %520 = vmatprep.subr.bf16.mxu0 %v1175_v54  ;;  %561 = vmatprep.subr.bf16.mxu1 %v1177_v55 }
  0x6a   :  { %521 = vmatpush2.bf16.msra.mxu0 %v1179_v56  ;;  %562 = vmatpush2.bf16.msra.mxu1 %v1180_v57 }
  0x6b   :  { %522 = vmatprep.subr.bf16.mxu0 %v1181_v59  ;;  %563 = vmatprep.subr.bf16.mxu1 %v1183_v61 }
  0x6e   :  { %523 = vmatpush2.bf16.msra.mxu0 %v1185_v62  ;;  %564 = vmatpush2.bf16.msra.mxu1 %v1186_v63 }
  0x6f   :  { %524 = vmatprep.subr.bf16.mxu0 %v1187_v0  ;;  %565 = vmatprep.subr.bf16.mxu1 %v1189_v1 }
  0x72   :  { %525 = vmatpush2.bf16.msra.mxu0 %v1191_v2  ;;  %566 = vmatpush2.bf16.msra.mxu1 %v1192_v3 }
  0x73   :  { %1044 = vmatprep.subr.bf16.mxu0 %v1195_v4  ;;  %1066 = vmatprep.subr.bf16.mxu1 %v1196_v5 }
  0x75   :  { %527 = vmatmul.mubr.bf16.vlgmr.msra.gmra.mxu0 %v945_v7  ;;  %568 = vmatmul.mubr.bf16.vlgmr.msra.gmra.mxu1 %v945_v7 }
  0x76   :  { %1045 = vmatpush3.bf16.msra.mxu0 %v1197_v6  ;;  %1067 = vmatpush3.bf16.msra.mxu1 %v1198_v8  ;;  %v1011_v6 = vld [vmem:[%s1405_s5] ss:$0 sm:$0xff] }
  0x77   :  { %1046 = vmatprep.subr.bf16.mxu0 %v1199_v9  ;;  %1068 = vmatprep.subr.bf16.mxu1 %v1200_v10 }
  0x7a   :  { %1047 = vmatpush3.bf16.msra.mxu0 %v1201_v11  ;;  %1069 = vmatpush3.bf16.msra.mxu1 %v1202_v12 }
  0x7b   :  { %1048 = vmatprep.subr.bf16.mxu0 %v1203_v13  ;;  %1070 = vmatprep.subr.bf16.mxu1 %v1204_v14 }
  0x7e   :  { %1049 = vmatpush3.bf16.msra.mxu0 %v1205_v15  ;;  %1071 = vmatpush3.bf16.msra.mxu1 %v1206_v16 }
  0x7f   :  { %1050 = vmatprep.subr.bf16.mxu0 %v1207_v17  ;;  %1072 = vmatprep.subr.bf16.mxu1 %v1208_v18 }
  0x82   :  { %1051 = vmatpush3.bf16.msra.mxu0 %v1209_v19  ;;  %1073 = vmatpush3.bf16.msra.mxu1 %v1210_v20 }
  0x83   :  { %1052 = vmatprep.subr.bf16.mxu0 %v1211_v21  ;;  %1074 = vmatprep.subr.bf16.mxu1 %v1212_v22 }
  0x86   :  { %1053 = vmatpush3.bf16.msra.mxu0 %v1213_v23  ;;  %1075 = vmatpush3.bf16.msra.mxu1 %v1214_v24 }
  0x87   :  { %1054 = vmatprep.subr.bf16.mxu0 %v1215_v25  ;;  %1076 = vmatprep.subr.bf16.mxu1 %v1216_v26 }
  0x8a   :  { %1055 = vmatpush3.bf16.msra.mxu0 %v1217_v27  ;;  %1077 = vmatpush3.bf16.msra.mxu1 %v1218_v28 }
  0x8b   :  { %1056 = vmatprep.subr.bf16.mxu0 %v1219_v29  ;;  %1078 = vmatprep.subr.bf16.mxu1 %v1220_v30 }
  0x8e   :  { %1057 = vmatpush3.bf16.msra.mxu0 %v1221_v31  ;;  %1079 = vmatpush3.bf16.msra.mxu1 %v1222_v32 }
  0x8f   :  { %1058 = vmatprep.subr.bf16.mxu0 %v1223_v33  ;;  %1080 = vmatprep.subr.bf16.mxu1 %v1224_v34 }
  0x92   :  { %1059 = vmatpush3.bf16.msra.mxu0 %v1225_v35  ;;  %1081 = vmatpush3.bf16.msra.mxu1 %v1226_v36 }
 0x135   :  { %v528_v48 = vpop.f32.mrf.mxu0  ;;  %v569_v49 = vpop.f32.mrf.mxu1 }
 0x136   :  { %v529_v50 = vadd.f32 %v528_v48, %v150_v44  ;;  %v570_v51 = vadd.f32 %v569_v49, %v158_v45 }
 0x137   :  { %v530_v52 = vpop.f32.mrf.mxu0  ;;  %v571_v53 = vpop.f32.mrf.mxu1 }
 0x138   :  { %v578_v54 = vmax.f32 %v570_v51, 0.0  ;;  %v531_v55 = vadd.f32 %v530_v52, %v154_v46  ;;  %v572_v56 = vadd.f32 %v571_v53, %v162_v47  ;;  %v576_v57 = vmax.f32 %v529_v50, 0.0 }
 0x139   :  { %v532_v58 = vpop.f32.mrf.mxu0  ;;  %v573_v59 = vpop.f32.mrf.mxu1 }
 0x13a   :  { %v577_v60 = vmax.f32 %v531_v55, 0.0  ;;  %v579_v61 = vmax.f32 %v572_v56, 0.0  ;;  %v582_v62 = vpack.c.bf16 %v578_v54, %v578_v54  ;;  %v580_v3 = vpack.c.bf16 %v576_v57, %v576_v57 }
 0x13b   :  { %v533_v63 = vpop.f32.mrf.mxu0  ;;  %v574_v0 = vpop.f32.mrf.mxu1 }
 0x13c   :  { %v581_v1 = vpack.c.bf16 %v577_v60, %v577_v60  ;;  %v583_v2 = vpack.c.bf16 %v579_v61, %v579_v61 }
 0x13e   :  { %879 = vmatprep.mubr.bf16.mxu0 %v581_v1  ;;  %919 = vmatprep.mubr.bf16.mxu1 %v583_v2 }
 0x13f   :  { %880 = vmatmul.mubr.bf16.vlgmr.msra.gmra.mxu0 %v580_v3  ;;  %920 = vmatmul.mubr.bf16.vlgmr.msra.gmra.mxu1 %v582_v62 }
 0x1ff   :  { %v1060_v4 = vpop.f32.mrf.mxu0  ;;  %v1082_v5 = vpop.f32.mrf.mxu1 }
 0x201   :  { %v1061_v7 = vpop.f32.mrf.mxu0  ;;  %v1083_v8 = vpop.f32.mrf.mxu1 }
 0x202   :  { %v1062_v9 = vadd.f32 %v1061_v7, %v1060_v4  ;;  %v1084_v13 = vadd.f32 %v1083_v8, %v1082_v5 }
 0x203   :  { %v1063_v10 = vpop.f32.mrf.mxu0  ;;  %v1085_v11 = vpop.f32.mrf.mxu1 }
 0x204   :  { %v882_v12 = vadd.f32 %v1062_v9, %v1011_v6 }
 0x205   :  { %v1064_v14 = vpop.f32.mrf.mxu0  ;;  %v1086_v15 = vpop.f32.mrf.mxu1 }
 0x206   :  { %v922_v16 = vadd.f32 %v1084_v13, %v882_v12 }
 0x208   :  { %927 = vst [vmem:[#allocation11] sm:$0xff] %v922_v16 }
 0x209   :  { %1318 = shalt.err (!%p1315_p10)
}
 0x20a   :  { %937 = dma.vmem_to_hbm [thread:$0]  %s935_s21, 128, %s1406_s6, [#allocation5]  }
 0x20b   :  { %1333 = dma.done.wait [#allocation5], 128  }
 0x20c   :  { %1334 = vsyncadd [#allocation5], 4294967168 }
 0x20d   :  { %941 = vsyncpa [#allocation4], 1 }
 0x20e   :  { %942 = vsyncpa [#allocation7], 1 }
 0x20f   :  { %943 = vsyncpa [#allocation10], 1 }
 0x210   :  { %944 = vsyncpa [#allocation5], 1 }

</bundles_post_ra>
